<compile_context>
chip_gen: v5e
topology: v5e:2x2
jax: 0.10.0
libtpu: 0.0.40
codegen_flags: <defaults>
</compile_context>

<pallas_src>
import math
import functools

import jax
import jax.numpy as jnp
from jax.experimental import pallas as pl
from jax.experimental.pallas import tpu as pltpu


_MASK_BIAS = -2e30    # additive bias for masked keys
_MASK_FLOOR = -1e30   # running-max floor (keeps exp() of masked scores at 0)


def _round_up(x, m):
    return ((x + m - 1) // m) * m


def _vmem_limit_bytes(frac=0.55, fallback=48 * 1024 * 1024):
    """Per-generation VMEM budget: 55% of physical VMEM (v5e/v6e: ~70 MiB,
    v7x: ~35 MiB of its 64 MiB), falling back to a conservative 48 MiB."""
    try:
        return int(pltpu.get_tpu_info().vmem_capacity_bytes * frac)
    except Exception:  # pragma: no cover - info query unavailable
        return fallback


# ---------------------------------------------------------------------------
# Tiled matmul + bias:  (M, K) @ (K, N) + b  -> (M, N), f32 accumulation.
# Grid (M//tm, N//tn, K//tk); K axis is the reduction ("arbitrary", last).
# ---------------------------------------------------------------------------
def _matmul_bias_kernel(x_ref, w_ref, b_ref, o_ref, acc_ref):
    @pl.when(pl.program_id(2) == 0)
    def _():
        acc_ref[...] = jnp.zeros_like(acc_ref)

    # bf16 operands feed the MXU; accumulation stays f32.
    acc_ref[...] += jnp.dot(x_ref[...], w_ref[...],
                            preferred_element_type=jnp.float32)

    @pl.when(pl.program_id(2) == pl.num_programs(2) - 1)
    def _():
        o_ref[...] = (acc_ref[...] + b_ref[...]).astype(o_ref.dtype)


def matmul_bias(x, w, b, *, out_dtype=jnp.float32, tm=512, tn=512, tk=512):
    M, K = x.shape
    _, N = w.shape

    # Tile = hardware-friendly target; small dims use the (always-legal) full
    # extent; large non-divisible dims are zero-padded up to a tile multiple.
    tm = tm if M > tm else M
    tn = tn if N > tn else N
    tk = tk if K > tk else K
    Mp, Np, Kp = _round_up(M, tm), _round_up(N, tn), _round_up(K, tk)

    xb = x.astype(jnp.bfloat16)
    wb = w.astype(jnp.bfloat16)
    bb = b.reshape(1, N).astype(jnp.float32)
    if (Mp, Kp) != (M, K):
        xb = jnp.pad(xb, ((0, Mp - M), (0, Kp - K)))
    if (Kp, Np) != (K, N):
        wb = jnp.pad(wb, ((0, Kp - K), (0, Np - N)))
    if Np != N:
        bb = jnp.pad(bb, ((0, 0), (0, Np - N)))

    out = pl.pallas_call(
        _matmul_bias_kernel,
        out_shape=jax.ShapeDtypeStruct((Mp, Np), out_dtype),
        grid=(Mp // tm, Np // tn, Kp // tk),
        in_specs=[
            pl.BlockSpec((tm, tk), lambda i, j, k: (i, k)),
            pl.BlockSpec((tk, tn), lambda i, j, k: (k, j)),
            pl.BlockSpec((1, tn), lambda i, j, k: (0, j)),
        ],
        out_specs=pl.BlockSpec((tm, tn), lambda i, j, k: (i, j)),
        scratch_shapes=[pltpu.VMEM((tm, tn), jnp.float32)],
        compiler_params=pltpu.CompilerParams(
            dimension_semantics=("parallel", "parallel", "arbitrary"),
            vmem_limit_bytes=_vmem_limit_bytes()),
    )(xb, wb, bb)

    if (Mp, Np) != (M, N):
        out = out[:M, :N]
    return out


# ---------------------------------------------------------------------------
# Flash-style attention over all heads of one batch element per grid step.
#   Q/K/V: (B*H, S, Dh) bf16, already PreSBN-normalized (and Q pre-scaled).
#   mask bias: (B, 1, S) f32 additive (0 valid / -2e30 masked).
#   Output: (B, S, H*Dh) bf16, lane-dense -- combine_heads fused into finalize.
#   grid = (B, S//tq, S//tk); kv axis is the online-softmax reduction.
# ---------------------------------------------------------------------------
def _flash_attn_kernel(q_ref, k_ref, v_ref, mb_ref, g_ref, be_ref, o_ref,
                       m_sc, l_sc, acc_sc, *, approx_recip):
    ki = pl.program_id(2)

    @pl.when(ki == 0)
    def _():
        m_sc[...] = jnp.full_like(m_sc, _MASK_FLOOR)
        l_sc[...] = jnp.zeros_like(l_sc)
        acc_sc[...] = jnp.zeros_like(acc_sc)

    # Scores: batched over heads, contracting head_dim directly (bf16 MXU, f32 acc).
    s = jnp.einsum("hqd,hkd->hqk", q_ref[...], k_ref[...],
                   preferred_element_type=jnp.float32)               # (H, tq, tk)
    s = s + mb_ref[0]                                                # key-pad bias

    # Online softmax; statistics stay f32.  m is floored at _MASK_FLOOR, so a
    # fully-masked tile yields p == 0 (no transient corruption of l / acc).
    m_prev = m_sc[...]
    m_new = jnp.maximum(m_prev, jnp.max(s, axis=-1, keepdims=True))
    alpha = jnp.exp(m_prev - m_new)
    p = jnp.exp(s - m_new)
    l_sc[...] = alpha * l_sc[...] + jnp.sum(p, axis=-1, keepdims=True)
    pv = jnp.einsum("hqk,hkd->hqd", p.astype(jnp.bfloat16), v_ref[...],
                    preferred_element_type=jnp.float32)              # (H, tq, Dh)
    acc_sc[...] = alpha * acc_sc[...] + pv
    m_sc[...] = m_new

    @pl.when(ki == pl.num_programs(2) - 1)
    def _():
        if approx_recip:
            out = acc_sc[...] * pl.reciprocal(l_sc[...], approx=True)
        else:
            out = acc_sc[...] / l_sc[...]
        # PostSBN: LayerNorm over head_dim (d_model = dim // num_head).
        mu = jnp.mean(out, axis=-1, keepdims=True)
        var = jnp.mean((out - mu) ** 2, axis=-1, keepdims=True)
        out = (out - mu) * jax.lax.rsqrt(var + 1e-5)
        out = (out * g_ref[...] + be_ref[...]).astype(o_ref.dtype)   # (H, tq, Dh)

        # Lane-dense store: combine heads into one (tq, H*Dh) slab via static
        # per-head lane slices (paid once per q-tile, amortized over kv steps).
        n_heads, _, dh = out.shape
        for h in range(n_heads):
            o_ref[0, :, h * dh:(h + 1) * dh] = out[h]


def flash_attention(Q, K, V, mask_bias, gamma, beta, *, num_head,
                    tq_target=256, tk_target=512, approx_recip=False):
    BH, S, Dh = Q.shape
    H = num_head
    B = BH // H

    # Sequence tiling: full extent for short sequences, 256/512 tiles with
    # zero-padding otherwise (tk_target is a multiple of tq_target).
    if S <= tq_target:
        tq = tk = S
        Sp = S
    else:
        tq, tk = tq_target, tk_target
        Sp = _round_up(S, tk)
    if Sp != S:
        pad = ((0, 0), (0, Sp - S), (0, 0))
        Q = jnp.pad(Q, pad)
        K = jnp.pad(K, pad)
        V = jnp.pad(V, pad)
        mask_bias = jnp.pad(mask_bias, ((0, 0), (0, 0), (0, Sp - S)),
                            constant_values=_MASK_BIAS)

    g = gamma.reshape(1, Dh).astype(jnp.float32)
    be = beta.reshape(1, Dh).astype(jnp.float32)

    kernel = functools.partial(_flash_attn_kernel, approx_recip=approx_recip)

    out = pl.pallas_call(
        kernel,
        out_shape=jax.ShapeDtypeStruct((B, Sp, H * Dh), jnp.bfloat16),
        grid=(B, Sp // tq, Sp // tk),
        in_specs=[
            pl.BlockSpec((H, tq, Dh), lambda b, qi, ki: (b, qi, 0)),
            pl.BlockSpec((H, tk, Dh), lambda b, qi, ki: (b, ki, 0)),
            pl.BlockSpec((H, tk, Dh), lambda b, qi, ki: (b, ki, 0)),
            pl.BlockSpec((1, 1, tk), lambda b, qi, ki: (b, 0, ki)),
            pl.BlockSpec((1, Dh), lambda b, qi, ki: (0, 0)),
            pl.BlockSpec((1, Dh), lambda b, qi, ki: (0, 0)),
        ],
        out_specs=pl.BlockSpec((1, tq, H * Dh), lambda b, qi, ki: (b, qi, 0)),
        scratch_shapes=[
            pltpu.VMEM((H, tq, 1), jnp.float32),    # running max
            pltpu.VMEM((H, tq, 1), jnp.float32),    # running denominator
            pltpu.VMEM((H, tq, Dh), jnp.float32),   # output accumulator
        ],
        compiler_params=pltpu.CompilerParams(
            dimension_semantics=("parallel", "parallel", "arbitrary"),
            vmem_limit_bytes=_vmem_limit_bytes()),
    )(Q, K, V, mask_bias, g, be)

    if Sp != S:
        out = out[:, :S, :]
    return out


# ---------------------------------------------------------------------------
# Full SchoenbAt forward (glue reshapes / elementwise pre-norm in plain JAX).
# ---------------------------------------------------------------------------
def schoenbat_forward(X, mask, params, *, approx_recip=False):
    B, S, D = X.shape
    H = params["num_head"]
    Dh = params["head_dim"]
    inner = H * Dh

    # Fused Q/K/V projection: one tiled matmul, X read from HBM once; bf16 output
    # halves the qkv writeback and everything downstream of it.
    Wqkv = jnp.concatenate([params["Wq"], params["Wk"], params["Wv"]], axis=1)
    bqkv = jnp.concatenate([params["bq"], params["bk"], params["bv"]], axis=0)
    qkv = matmul_bias(X.reshape(B * S, D), Wqkv, bqkv,
                      out_dtype=jnp.bfloat16)                        # (B*S, 3*inner)
    qkv = qkv.reshape(B, S, 3, H, Dh)

    # PreSBN (L2-normalize along head_dim) applied ONCE here, fused by XLA with
    # the head-split transpose; the 1/sqrt(Dh) attention scale is folded into Q.
    def _l2norm(t):
        t32 = t.astype(jnp.float32)
        return t32 * jax.lax.rsqrt(jnp.sum(t32 * t32, axis=-1, keepdims=True) + 1e-6)

    scale = 1.0 / math.sqrt(Dh)
    q = (_l2norm(qkv[:, :, 0]) * scale).astype(jnp.bfloat16)
    k = _l2norm(qkv[:, :, 1]).astype(jnp.bfloat16)
    v = qkv[:, :, 2]                                                 # already bf16

    def heads(t):                                                    # -> (B*H, S, Dh)
        return jnp.transpose(t, (0, 2, 1, 3)).reshape(B * H, S, Dh)

    # Additive key-padding bias (0 valid / -2e30 masked), computed once.
    mask_bias = jnp.where(mask > 0.0, 0.0, _MASK_BIAS).astype(jnp.float32)
    mask_bias = mask_bias.reshape(B, 1, S)

    # Flash attention emits a lane-dense (B, S, H*Dh) bf16 tensor -> no wrapper
    # combine_heads transpose needed.
    attn = flash_attention(heads(q), heads(k), heads(v), mask_bias,
                           params["gamma"], params["beta"],
                           num_head=H, approx_recip=approx_recip)

    out = matmul_bias(attn.reshape(B * S, inner), params["Wff"], params["bff"],
                      out_dtype=jnp.float32)                         # (B*S, D)
    return out.reshape(B, S, D)


if __name__ == "__main__":
    B, S = 2, 8
    dim, num_head, head_dim = 32, 4, 8          # dim // num_head == head_dim
    inner = num_head * head_dim

    key = jax.random.PRNGKey(0)
    ks = jax.random.split(key, 8)

    def init_w(k, shape):
        return jax.random.normal(k, shape, jnp.float32) * 0.02

    params = {
        "num_head": num_head,
        "head_dim": head_dim,
        "Wq": init_w(ks[0], (dim, inner)), "bq": jnp.zeros((inner,), jnp.float32),
        "Wk": init_w(ks[1], (dim, inner)), "bk": jnp.zeros((inner,), jnp.float32),
        "Wv": init_w(ks[2], (dim, inner)), "bv": jnp.zeros((inner,), jnp.float32),
        "Wff": init_w(ks[3], (inner, dim)), "bff": jnp.zeros((dim,), jnp.float32),
        # PostSBN (LayerNorm) params, default init.
        "gamma": jnp.ones((head_dim,), jnp.float32),
        "beta": jnp.zeros((head_dim,), jnp.float32),
    }

    X = jax.random.normal(ks[4], (B, S, dim), jnp.float32)
    mask = jnp.ones((B, S), jnp.float32).at[:, -2:].set(0.0)   # last 2 keys padded

    out = schoenbat_forward(X, mask, params)
    jax.block_until_ready(out)
    assert out.shape == (B, S, dim) and out.dtype == jnp.float32
    assert bool(jnp.all(jnp.isfinite(out)))
    print("KERNEL_OK")
</pallas_src>

<mosaic_0001>
module attributes {stable_mosaic.version = 11 : i64} {
  func.func @_matmul_bias_kernel(%arg0: i32, %arg1: i32, %arg2: i32, %arg3: memref<16x32xbf16, #tpu.memory_space<vmem>>, %arg4: memref<32x96xbf16, #tpu.memory_space<vmem>>, %arg5: memref<1x96xf32, #tpu.memory_space<vmem>>, %arg6: memref<16x96xbf16, #tpu.memory_space<vmem>>, %arg7: memref<16x96xf32, #tpu.memory_space<vmem>>) attributes {dimension_semantics = [#tpu.dimension_semantics<parallel>, #tpu.dimension_semantics<parallel>, #tpu.dimension_semantics<arbitrary>], iteration_bounds = array<i64: 1, 1, 1>, scalar_prefetch = 0 : i64, scratch_operands = 1 : i64, tpu.core_type = #tpu.core_type<tc>, window_params = [{transform_indices = @transform_0, window_bounds = array<i64: 16, 32>}, {transform_indices = @transform_1, window_bounds = array<i64: 32, 96>}, {transform_indices = @transform_2, window_bounds = array<i64: 1, 96>}, {transform_indices = @transform_3, window_bounds = array<i64: 16, 96>}]} {
    %c0_i32 = arith.constant 0 : i32
    %0 = arith.cmpi eq, %arg2, %c0_i32 : i32
    %1 = arith.extui %0 : i1 to i32
    %c0_i32_0 = arith.constant 0 : i32
    %2 = arith.cmpi ne, %1, %c0_i32_0 : i32
    scf.if %2 {
      %cst_10 = arith.constant 0.000000e+00 : f32
      %12 = vector.broadcast %cst_10 : f32 to vector<16x96xf32>
      %c0_11 = arith.constant 0 : index
      %c0_12 = arith.constant 0 : index
      %13 = vector.load %arg7[%c0_11, %c0_12] : memref<16x96xf32, #tpu.memory_space<vmem>>, vector<16x96xf32>
      tpu.vector_store %arg7[%c0_11, %c0_12], %12 {strides = array<i32>} : memref<16x96xf32, #tpu.memory_space<vmem>>, vector<16x96xf32>,
    } else {
    }
    %c0 = arith.constant 0 : index
    %c0_1 = arith.constant 0 : index
    %3 = vector.load %arg7[%c0, %c0_1] : memref<16x96xf32, #tpu.memory_space<vmem>>, vector<16x96xf32>
    %c0_2 = arith.constant 0 : index
    %c0_3 = arith.constant 0 : index
    %4 = vector.load %arg3[%c0_2, %c0_3] : memref<16x32xbf16, #tpu.memory_space<vmem>>, vector<16x32xbf16>
    %c0_4 = arith.constant 0 : index
    %c0_5 = arith.constant 0 : index
    %5 = vector.load %arg4[%c0_4, %c0_5] : memref<32x96xbf16, #tpu.memory_space<vmem>>, vector<32x96xbf16>
    %cst = arith.constant dense<0.000000e+00> : vector<16x96xf32>
    %6 = tpu.matmul %4, %5, %cst {dimension_numbers = #tpu.dot_dimension_numbers<[1], [0], [0], [1], [0, 0, 1, 1], [], []>} : vector<16x32xbf16>, vector<32x96xbf16>, vector<16x96xf32> -> vector<16x96xf32>
    %7 = arith.addf %3, %6 : vector<16x96xf32>
    %c0_6 = arith.constant 0 : index
    %c0_7 = arith.constant 0 : index
    %8 = vector.load %arg7[%c0_6, %c0_7] : memref<16x96xf32, #tpu.memory_space<vmem>>, vector<16x96xf32>
    tpu.vector_store %arg7[%c0_6, %c0_7], %7 {strides = array<i32>} : memref<16x96xf32, #tpu.memory_space<vmem>>, vector<16x96xf32>,
    %c0_i32_8 = arith.constant 0 : i32
    %9 = arith.cmpi eq, %arg2, %c0_i32_8 : i32
    %10 = arith.extui %9 : i1 to i32
    %c0_i32_9 = arith.constant 0 : i32
    %11 = arith.cmpi ne, %10, %c0_i32_9 : i32
    scf.if %11 {
      %c0_10 = arith.constant 0 : index
      %c0_11 = arith.constant 0 : index
      %12 = vector.load %arg7[%c0_10, %c0_11] : memref<16x96xf32, #tpu.memory_space<vmem>>, vector<16x96xf32>
      %c0_12 = arith.constant 0 : index
      %c0_13 = arith.constant 0 : index
      %13 = vector.load %arg5[%c0_12, %c0_13] : memref<1x96xf32, #tpu.memory_space<vmem>>, vector<1x96xf32>
      %14 = vector.broadcast %13 : vector<1x96xf32> to vector<16x96xf32>
      %15 = arith.addf %12, %14 : vector<16x96xf32>
      %16 = arith.truncf %15 : vector<16x96xf32> to vector<16x96xbf16>
      %c0_14 = arith.constant 0 : index
      %c0_15 = arith.constant 0 : index
      %17 = vector.load %arg6[%c0_14, %c0_15] : memref<16x96xbf16, #tpu.memory_space<vmem>>, vector<16x96xbf16>
      tpu.vector_store %arg6[%c0_14, %c0_15], %16 {strides = array<i32>} : memref<16x96xbf16, #tpu.memory_space<vmem>>, vector<16x96xbf16>,
    } else {
    }
    return
  }
  func.func @transform_0(%arg0: i32, %arg1: i32, %arg2: i32) -> (i32, i32) {
    %c0_i32 = arith.constant 0 : i32
    return %arg0, %arg2 : i32, i32
  }
  func.func @transform_1(%arg0: i32, %arg1: i32, %arg2: i32) -> (i32, i32) {
    %c0_i32 = arith.constant 0 : i32
    return %arg2, %arg1 : i32, i32
  }
  func.func @transform_2(%arg0: i32, %arg1: i32, %arg2: i32) -> (i32, i32) {
    %c0_i32 = arith.constant 0 : i32
    %c0_i32_0 = arith.constant 0 : i32
    return %c0_i32, %arg1 : i32, i32
  }
  func.func @transform_3(%arg0: i32, %arg1: i32, %arg2: i32) -> (i32, i32) {
    %c0_i32 = arith.constant 0 : i32
    return %arg0, %arg1 : i32, i32
  }
}

</mosaic_0001>

<bundles_post_ra>
// kernel: tpu_custom_call.1
= control target key start
LH: loop header
LB: loop body
LE: loop exit
PB: predicated region body
PF: predicated region fallthrough
CT: control target
= control target key end

     0   :  { %8 = vsyncpa [#allocation4], 0  ;;  %s291_s0 = inlined_call_operand.hbm [shape: bf16[16,32], index: 0, kind: input, shape index: {}]   ;;  %s292_s1 = inlined_call_operand.hbm [shape: bf16[32,96], index: 1, kind: input, shape index: {}]   ;;  %s293_s2 = inlined_call_operand.vmem [shape: f32[1,96], index: 2, kind: input, shape index: {}]   ;;  %s294_s3 = inlined_call_operand.hbm [shape: bf16[16,96], index: 3, kind: output, shape index: {}]  }
   0x1   :  { %9 = vsyncpa [#allocation7], 0 }
   0x2   :  { %10 = vsyncpa [#allocation5], 0  ;;  %s15_s14 = sshll.u32 %s291_s0, 4  ;;  %s240_s15 = smov [#allocation3]   ;;  %s16_s14 = int_to_ptr.hbm [resolvable:$true] %s15_s14 }
   0x3   :  { %s17_s16 = sshll.u32 %s240_s15, 4  ;;  %s28_s19 = sshll.u32 %s292_s1, 4  ;;  %s18_s16 = int_to_ptr.vmem [resolvable:$true] %s17_s16  ;;  %s29_s19 = int_to_ptr.hbm [resolvable:$true] %s28_s19 }
   0x4   :  { %s241_s20 = smov 64   ;;  %s242_s21 = smov 4  }
   0x5   :  { %23 = dma.hbm_to_vmem [thread:$0]  %s16_s14, 128, %s18_s16, [#allocation4], %s241_s20, %s241_s20, %s242_s21  }
   0x6   :  { %s243_s22 = smov [#allocation6]  }
   0x7   :  { %s30_s23 = sshll.u32 %s243_s22, 4  ;;  %s31_s23 = int_to_ptr.vmem [resolvable:$true] %s30_s23 }
   0x8   :  { %36 = dma.hbm_to_vmem [thread:$0]  %s29_s19, 256, %s31_s23, [#allocation7], %s241_s20, %s241_s20, %s242_s21  }
   0x9   :  { %234 = dma.done.wait [#allocation4], 128  }
   0xa   :  { %235 = vsyncadd [#allocation4], 4294967168 }
   0xb   :  { %236 = dma.done.wait [#allocation7], 256  }
   0xc   :  { %237 = vsyncadd [#allocation7], 4294967040  ;;  %vm52_vm0 = vcmask 785408   ;;  %v244_v0 = vmov 0.0   ;;  %v154_v1 = vld [vmem:[#allocation6 + $0x8] sm:$0xff]  ;;  %v153_v2 = vld [vmem:[#allocation6] sm:$0xff] }
   0xd   :  { %53 = vst.msk [vmem:[#allocation2] sm:$0xff] %vm52_vm0, %v244_v0  ;;  %90 = vmatpush.bf16.msra.mxu0 %v154_v1  ;;  %v152_v3 = vld [vmem:[#allocation3] sm:$0xff]  ;;  %vm80_vm1 = vcmask 261120   ;;  %v161_v8 = vld [vmem:[%s293_s2] ss:$0 sm:$0xff]  ;;  %vm116_vm2 = vcmask 781312  }
   0xe   :  { %54 = vst.msk [vmem:[#allocation2 + $0x8] sm:$0xff] %vm52_vm0, %v244_v0  ;;  %s245_s24 = smov [#allocation8]   ;;  %s125_s28 = sshll.u32 %s294_s3, 4  ;;  %s126_s28 = int_to_ptr.hbm [resolvable:$true] %s125_s28 }
   0xf   :  { %s123_s25 = sshll.u32 %s245_s24, 4  ;;  %s124_s25 = int_to_ptr.vmem [resolvable:$true] %s123_s25 }
  0x11   :  { %91 = vmatpush.bf16.msra.mxu0 %v153_v2 }
  0x14   :  { %151 = vmatmul.msk.bf16.vlgmr.msra.gmra.mxu0 %vm80_vm1, %v152_v3  ;;  %v55_v4 = vld [vmem:[#allocation2] sm:$0xff] }
  0x15   :  { %v56_v7 = vld [vmem:[#allocation2 + $0x8] sm:$0xff] }
  0x91   :  { %v93_v5 = vpop.f32.mrf.mxu0 }
  0x92   :  { %v98_v6 = vadd.f32 %v93_v5, %v55_v4 }
  0x94   :  { %101 = vst.msk [vmem:[#allocation2] sm:$0xff] %vm52_vm0, %v98_v6 }
  0x99   :  { %v95_v9 = vpop.f32.mrf.mxu0 }
  0x9a   :  { %v99_v10 = vadd.f32 %v95_v9, %v56_v7 }
  0x9b   :  { %v106_v11 = vld [vmem:[#allocation2] sm:$0xff] }
  0x9c   :  { %102 = vst.msk [vmem:[#allocation2 + $0x8] sm:$0xff] %vm52_vm0, %v99_v10  ;;  %v112_v12 = vadd.f32 %v161_v8, %v106_v11 }
  0x9e   :  { %v114_v13 = vpack.c.bf16 %v112_v12, %v112_v12 }
  0xa0   :  { %117 = vst.msk [vmem:[#allocation8] sm:$0xf] %vm116_vm2, %v114_v13 }
  0xa3   :  { %v107_v14 = vld [vmem:[#allocation2 + $0x8] sm:$0xff] }
  0xa4   :  { %v113_v15 = vadd.f32 %v161_v8, %v107_v14 }
  0xa6   :  { %v115_v16 = vpack.c.bf16 %v113_v15, %v113_v15 }
  0xa8   :  { %118 = vst.msk [vmem:[#allocation8 + $0x4] sm:$0xf] %vm116_vm2, %v115_v16 }
  0xa9   :  { %131 = dma.vmem_to_hbm [thread:$0]  %s124_s25, 128, %s126_s28, [#allocation5], %s241_s20, %s241_s20, %s242_s21  }
  0xaa   :  { %238 = dma.done.wait [#allocation5], 128  }
  0xab   :  { %239 = vsyncadd [#allocation5], 4294967168 }
  0xac   :  { %136 = vsyncpa [#allocation4], 1 }
  0xad   :  { %137 = vsyncpa [#allocation7], 1 }
  0xae   :  { %138 = vsyncpa [#allocation5], 1 }

</bundles_post_ra>
